<compile_context>
chip_gen: v7x
topology: tpu7x:2x2x1
jax: 0.10.0
libtpu: 0.0.40
codegen_flags: <defaults>
</compile_context>

<pallas_src>
import functools
import math

import jax
import jax.numpy as jnp
from jax import lax
from jax.experimental import pallas as pl
from jax.experimental.pallas import tpu as pltpu


def _gelu_exact(x):
    # PyTorch nn.GELU() default = exact (erf-based) GELU.
    return 0.5 * x * (1.0 + lax.erf(x * (1.0 / math.sqrt(2.0))))


def _msa_kernel(x_ref, wqkv_ref, bqkv_ref, wo_ref, bo_ref, o_ref,
                *, scale, tb, seq, dim, matmul_dtype):
    def mm(a, b):
        if matmul_dtype is not None:
            a = a.astype(matmul_dtype)
            b = b.astype(matmul_dtype)
        return jnp.dot(a, b, preferred_element_type=jnp.float32)

    # (TB, S, D) block -> (TB*S, D) rows so the projection matmuls have a fat M.
    x = x_ref[...].reshape(tb * seq, dim)

    # Fused Q/K/V projection: one (TB*S, D) @ (D, 3D) MXU pass + bias + GELU.
    h = _gelu_exact(mm(x, wqkv_ref[...]) + bqkv_ref[...])          # (TB*S, 3D) f32

    # Slice back out; fold the 1/sqrt(D) attention scale into the query.
    q = (h[:, 0 * dim:1 * dim] * scale).reshape(tb, seq, dim)
    k = h[:, 1 * dim:2 * dim].reshape(tb, seq, dim)
    v = h[:, 2 * dim:3 * dim].reshape(tb, seq, dim)

    if matmul_dtype is not None:
        q = q.astype(matmul_dtype)
        k = k.astype(matmul_dtype)

    # scores = (Q/sqrt(D)) @ K^T -- batched contraction over the last axes,
    # no explicit transpose materialized.
    scores = jnp.einsum("bqd,bkd->bqk", q, k,
                        preferred_element_type=jnp.float32)        # (TB, S, S)

    # Numerically stable softmax; reciprocal goes to the (otherwise idle) EUP.
    scores = scores - jnp.max(scores, axis=-1, keepdims=True)
    e = jnp.exp(scores)
    attn = e * pl.reciprocal(jnp.sum(e, axis=-1, keepdims=True), approx=True)

    if matmul_dtype is not None:
        attn = attn.astype(matmul_dtype)
        v = v.astype(matmul_dtype)
    weighted = jnp.einsum("bqk,bkd->bqd", attn, v,
                          preferred_element_type=jnp.float32)      # (TB, S, D)

    # Output projection + GELU on the flattened (TB*S, D) rows.
    out = _gelu_exact(mm(weighted.reshape(tb * seq, dim), wo_ref[...]) + bo_ref[...])
    o_ref[...] = out.reshape(tb, seq, dim).astype(o_ref.dtype)


def _choose_row_block(B, S, target_rows=256):
    """Largest divisor TB of B with TB*S <= target_rows (at least 1)."""
    best = 1
    for tb in range(1, B + 1):
        if B % tb == 0 and tb * S <= max(target_rows, S):
            best = tb
    return best


def multi_length_self_attention(x, params, *, matmul_dtype=None, target_rows=256):
    """x: (B, S, D) float32. params: dict of (D, D) weights and (1, D) biases.

    matmul_dtype: set to jnp.bfloat16 on v6e/v7x for MXU-side bf16 operands
    (accumulation stays f32); leave None for exact-f32 matmuls.
    """
    B, S, D = x.shape
    scale = 1.0 / math.sqrt(float(D))

    # Fuse the three projection weights/biases into a single (D, 3D) / (1, 3D).
    wqkv = jnp.concatenate([params["wq"], params["wk"], params["wv"]], axis=1)
    bqkv = jnp.concatenate([params["bq"], params["bk"], params["bv"]], axis=1)
    wo, bo = params["wo"], params["bo"]
    if matmul_dtype is not None:
        # Pre-cast weights once in the wrapper (halves weight DMA bytes).
        wqkv = wqkv.astype(matmul_dtype)
        wo = wo.astype(matmul_dtype)

    # TODO(synk): for realistic S (>= 2k) the monolithic (TB, S, S) score tensor
    # should be replaced by a flash-style online softmax over KV tiles (v7x VMEM
    # is only 64 MiB); fine at these shapes.
    TB = _choose_row_block(B, S, target_rows)
    grid = (B // TB,)

    x_spec = pl.BlockSpec((TB, S, D), lambda b: (b, 0, 0))
    wqkv_spec = pl.BlockSpec((D, 3 * D), lambda b: (0, 0))
    bqkv_spec = pl.BlockSpec((1, 3 * D), lambda b: (0, 0))
    wo_spec = pl.BlockSpec((D, D), lambda b: (0, 0))
    bo_spec = pl.BlockSpec((1, D), lambda b: (0, 0))

    # Rough VMEM budget (double-buffered I/O blocks + weights + live intermediates).
    f32b = 4
    io_bytes = 2 * (2 * TB * S * D * f32b)                         # x + out, 2 bufs each
    w_bytes = 2 * ((3 * D * D + 3 * D + D * D + D) * f32b)         # 2 bufs per weight spec
    interm_bytes = (TB * S * 3 * D + 2 * TB * S * S + 2 * TB * S * D) * f32b
    vmem_limit = int(min(64 * 1024 * 1024,
                         max(32 * 1024 * 1024, 2 * (io_bytes + w_bytes + interm_bytes))))

    # Advisory cost estimate for the XLA scheduler.
    flops = (2 * B * S * D * (3 * D)       # fused QKV projection
             + 2 * B * S * S * D           # QK^T
             + 2 * B * S * S * D           # attn @ V
             + 2 * B * S * D * D)          # output projection
    transcendentals = 4 * B * S * D + B * S * S   # erf (4 GELUs) + exp (softmax)
    bytes_accessed = (2 * B * S * D + 4 * D * D + 4 * D) * f32b
    cost = pl.CostEstimate(flops=flops, transcendentals=transcendentals,
                           bytes_accessed=bytes_accessed)

    kernel = functools.partial(_msa_kernel, scale=scale, tb=TB, seq=S, dim=D,
                               matmul_dtype=matmul_dtype)

    return pl.pallas_call(
        kernel,
        out_shape=jax.ShapeDtypeStruct((B, S, D), x.dtype),
        grid=grid,
        in_specs=[x_spec, wqkv_spec, bqkv_spec, wo_spec, bo_spec],
        out_specs=x_spec,
        compiler_params=pltpu.CompilerParams(
            dimension_semantics=("parallel",),
            vmem_limit_bytes=vmem_limit),
        cost_estimate=cost,
    )(x, wqkv, bqkv, wo, bo)


def _reference(x, params):
    """Pure-JAX reference of the PyTorch forward pass."""
    def lin_gelu(h, w, b):
        return jax.nn.gelu(h @ w + b, approximate=False)

    D = x.shape[-1]
    value = lin_gelu(x, params["wv"], params["bv"])
    key = lin_gelu(x, params["wk"], params["bk"])
    query = lin_gelu(x, params["wq"], params["bq"])
    scores = jnp.einsum("bsd,btd->bst", query, key) / jnp.sqrt(jnp.float32(D))
    attn = jax.nn.softmax(scores, axis=-1)
    weighted = jnp.einsum("bst,btd->bsd", attn, value)
    return lin_gelu(weighted, params["wo"], params["bo"])


def _init_params(key, dim):
    ks = jax.random.split(key, 8)
    s = 1.0 / math.sqrt(dim)

    def w(k):
        return jax.random.uniform(k, (dim, dim), jnp.float32, -s, s)

    def b(k):
        return jax.random.uniform(k, (1, dim), jnp.float32, -s, s)

    return {
        "wv": w(ks[0]), "bv": b(ks[1]),
        "wk": w(ks[2]), "bk": b(ks[3]),
        "wq": w(ks[4]), "bq": b(ks[5]),
        "wo": w(ks[6]), "bo": b(ks[7]),
    }


if __name__ == "__main__":
    B, S, D = 2, 8, 32  # batch, sequence, dim

    root = jax.random.PRNGKey(0)
    kx, kp = jax.random.split(root)
    x = jax.random.normal(kx, (B, S, D), jnp.float32)
    params = _init_params(kp, D)

    out = multi_length_self_attention(x, params)   # f32 matmuls (exact-ish path)
    out = jax.block_until_ready(out)

    ref = _reference(x, params)
    assert out.shape == (B, S, D)
    # Tolerance loosened slightly vs 1e-5 to accommodate approx=True reciprocal.
    assert jnp.allclose(out, ref, atol=2e-3, rtol=2e-3), (
        f"max abs err {jnp.max(jnp.abs(out - ref))}")

    print("KERNEL_OK")
</pallas_src>

<mosaic_0001>
module attributes {stable_mosaic.version = 11 : i64} {
  func.func @_msa_kernel(%arg0: i32, %arg1: memref<2x8x32xf32, #tpu.memory_space<vmem>>, %arg2: memref<32x96xf32, #tpu.memory_space<vmem>>, %arg3: memref<1x96xf32, #tpu.memory_space<vmem>>, %arg4: memref<32x32xf32, #tpu.memory_space<vmem>>, %arg5: memref<1x32xf32, #tpu.memory_space<vmem>>, %arg6: memref<2x8x32xf32, #tpu.memory_space<vmem>>) attributes {dimension_semantics = [#tpu.dimension_semantics<parallel>], iteration_bounds = array<i64: 1>, scalar_prefetch = 0 : i64, scratch_operands = 0 : i64, tpu.core_type = #tpu.core_type<tc>, window_params = [{transform_indices = @transform_0, window_bounds = array<i64: 2, 8, 32>}, {pipeline_mode = #tpu.pipeline_mode<synchronous>, transform_indices = @transform_1, window_bounds = array<i64: 32, 96>}, {pipeline_mode = #tpu.pipeline_mode<synchronous>, transform_indices = @transform_2, window_bounds = array<i64: 1, 96>}, {pipeline_mode = #tpu.pipeline_mode<synchronous>, transform_indices = @transform_3, window_bounds = array<i64: 32, 32>}, {pipeline_mode = #tpu.pipeline_mode<synchronous>, transform_indices = @transform_4, window_bounds = array<i64: 1, 32>}, {transform_indices = @transform_5, window_bounds = array<i64: 2, 8, 32>}]} {
    %c0 = arith.constant 0 : index
    %c0_0 = arith.constant 0 : index
    %c0_1 = arith.constant 0 : index
    %0 = vector.load %arg1[%c0, %c0_0, %c0_1] : memref<2x8x32xf32, #tpu.memory_space<vmem>>, vector<2x8x32xf32>
    %1 = vector.shape_cast %0 : vector<2x8x32xf32> to vector<16x32xf32>
    %c0_2 = arith.constant 0 : index
    %c0_3 = arith.constant 0 : index
    %2 = vector.load %arg2[%c0_2, %c0_3] : memref<32x96xf32, #tpu.memory_space<vmem>>, vector<32x96xf32>
    %cst = arith.constant dense<0.000000e+00> : vector<16x96xf32>
    %3 = tpu.matmul %1, %2, %cst {dimension_numbers = #tpu.dot_dimension_numbers<[1], [0], [0], [1], [0, 0, 1, 1], [], []>} : vector<16x32xf32>, vector<32x96xf32>, vector<16x96xf32> -> vector<16x96xf32>
    %c0_4 = arith.constant 0 : index
    %c0_5 = arith.constant 0 : index
    %4 = vector.load %arg3[%c0_4, %c0_5] : memref<1x96xf32, #tpu.memory_space<vmem>>, vector<1x96xf32>
    %5 = vector.broadcast %4 : vector<1x96xf32> to vector<16x96xf32>
    %6 = arith.addf %3, %5 : vector<16x96xf32>
    %cst_6 = arith.constant 5.000000e-01 : f32
    %7 = vector.broadcast %cst_6 : f32 to vector<16x96xf32>
    %8 = arith.mulf %7, %6 : vector<16x96xf32>
    %cst_7 = arith.constant 0.707106769 : f32
    %9 = vector.broadcast %cst_7 : f32 to vector<16x96xf32>
    %10 = arith.mulf %6, %9 : vector<16x96xf32>
    %11 = math.erf %10 : vector<16x96xf32>
    %cst_8 = arith.constant 1.000000e+00 : f32
    %12 = vector.broadcast %cst_8 : f32 to vector<16x96xf32>
    %13 = arith.addf %12, %11 : vector<16x96xf32>
    %14 = arith.mulf %8, %13 : vector<16x96xf32>
    %15 = vector.extract_strided_slice %14 {offsets = [0, 0], sizes = [16, 32], strides = [1, 1]} : vector<16x96xf32> to vector<16x32xf32>
    %cst_9 = arith.constant 0.176776692 : f32
    %16 = vector.broadcast %cst_9 : f32 to vector<16x32xf32>
    %17 = arith.mulf %15, %16 : vector<16x32xf32>
    %18 = vector.shape_cast %17 : vector<16x32xf32> to vector<2x8x32xf32>
    %19 = vector.extract_strided_slice %14 {offsets = [0, 32], sizes = [16, 32], strides = [1, 1]} : vector<16x96xf32> to vector<16x32xf32>
    %20 = vector.shape_cast %19 : vector<16x32xf32> to vector<2x8x32xf32>
    %21 = vector.extract_strided_slice %14 {offsets = [0, 64], sizes = [16, 32], strides = [1, 1]} : vector<16x96xf32> to vector<16x32xf32>
    %22 = vector.shape_cast %21 : vector<16x32xf32> to vector<2x8x32xf32>
    "tpu.trace_start"() <{level = 10 : i32, message = "bqd,bkd->bqk"}> : () -> ()
    %cst_10 = arith.constant dense<0.000000e+00> : vector<2x8x8xf32>
    %23 = tpu.matmul %18, %20, %cst_10 {dimension_numbers = #tpu.dot_dimension_numbers<[2], [2], [1], [1], [0, 0, 0, 1, 1, 1], [0], [0]>} : vector<2x8x32xf32>, vector<2x8x32xf32>, vector<2x8x8xf32> -> vector<2x8x8xf32>
    "tpu.trace_stop"() : () -> ()
    %cst_11 = arith.constant dense<0xFF800000> : vector<2x8xf32>
    %24 = vector.multi_reduction <maximumf>, %23, %cst_11 [2] : vector<2x8x8xf32> to vector<2x8xf32>
    %25 = vector.shape_cast %24 : vector<2x8xf32> to vector<2x8x1xf32>
    %26 = vector.broadcast %25 : vector<2x8x1xf32> to vector<2x8x8xf32>
    %27 = arith.subf %23, %26 : vector<2x8x8xf32>
    %28 = math.exp %27 : vector<2x8x8xf32>
    %cst_12 = arith.constant dense<0.000000e+00> : vector<2x8xf32>
    %29 = vector.multi_reduction <add>, %28, %cst_12 [2] : vector<2x8x8xf32> to vector<2x8xf32>
    %30 = vector.shape_cast %29 : vector<2x8xf32> to vector<2x8x1xf32>
    %31 = tpu.reciprocal %30 {approx = true} : vector<2x8x1xf32> -> vector<2x8x1xf32>
    %32 = vector.broadcast %31 : vector<2x8x1xf32> to vector<2x8x8xf32>
    %33 = arith.mulf %28, %32 : vector<2x8x8xf32>
    "tpu.trace_start"() <{level = 10 : i32, message = "bqk,bkd->bqd"}> : () -> ()
    %cst_13 = arith.constant dense<0.000000e+00> : vector<2x8x32xf32>
    %34 = tpu.matmul %33, %22, %cst_13 {dimension_numbers = #tpu.dot_dimension_numbers<[2], [1], [1], [2], [0, 0, 0, 1, 1, 2], [0], [0]>} : vector<2x8x8xf32>, vector<2x8x32xf32>, vector<2x8x32xf32> -> vector<2x8x32xf32>
    "tpu.trace_stop"() : () -> ()
    %35 = vector.shape_cast %34 : vector<2x8x32xf32> to vector<16x32xf32>
    %c0_14 = arith.constant 0 : index
    %c0_15 = arith.constant 0 : index
    %36 = vector.load %arg4[%c0_14, %c0_15] : memref<32x32xf32, #tpu.memory_space<vmem>>, vector<32x32xf32>
    %cst_16 = arith.constant dense<0.000000e+00> : vector<16x32xf32>
    %37 = tpu.matmul %35, %36, %cst_16 {dimension_numbers = #tpu.dot_dimension_numbers<[1], [0], [0], [1], [0, 0, 1, 1], [], []>} : vector<16x32xf32>, vector<32x32xf32>, vector<16x32xf32> -> vector<16x32xf32>
    %c0_17 = arith.constant 0 : index
    %c0_18 = arith.constant 0 : index
    %38 = vector.load %arg5[%c0_17, %c0_18] : memref<1x32xf32, #tpu.memory_space<vmem>>, vector<1x32xf32>
    %39 = vector.broadcast %38 : vector<1x32xf32> to vector<16x32xf32>
    %40 = arith.addf %37, %39 : vector<16x32xf32>
    %cst_19 = arith.constant 5.000000e-01 : f32
    %41 = vector.broadcast %cst_19 : f32 to vector<16x32xf32>
    %42 = arith.mulf %41, %40 : vector<16x32xf32>
    %cst_20 = arith.constant 0.707106769 : f32
    %43 = vector.broadcast %cst_20 : f32 to vector<16x32xf32>
    %44 = arith.mulf %40, %43 : vector<16x32xf32>
    %45 = math.erf %44 : vector<16x32xf32>
    %cst_21 = arith.constant 1.000000e+00 : f32
    %46 = vector.broadcast %cst_21 : f32 to vector<16x32xf32>
    %47 = arith.addf %46, %45 : vector<16x32xf32>
    %48 = arith.mulf %42, %47 : vector<16x32xf32>
    %49 = vector.shape_cast %48 : vector<16x32xf32> to vector<2x8x32xf32>
    %c0_22 = arith.constant 0 : index
    %c0_23 = arith.constant 0 : index
    %c0_24 = arith.constant 0 : index
    %50 = vector.load %arg6[%c0_22, %c0_23, %c0_24] : memref<2x8x32xf32, #tpu.memory_space<vmem>>, vector<2x8x32xf32>
    tpu.vector_store %arg6[%c0_22, %c0_23, %c0_24], %49 {strides = array<i32>} : memref<2x8x32xf32, #tpu.memory_space<vmem>>, vector<2x8x32xf32>,
    return
  }
  func.func @transform_0(%arg0: i32) -> (i32, i32, i32) {
    %c0_i32 = arith.constant 0 : i32
    %c0_i32_0 = arith.constant 0 : i32
    %c0_i32_1 = arith.constant 0 : i32
    return %arg0, %c0_i32, %c0_i32_0 : i32, i32, i32
  }
  func.func @transform_1(%arg0: i32) -> (i32, i32) {
    %c0_i32 = arith.constant 0 : i32
    %c0_i32_0 = arith.constant 0 : i32
    %c0_i32_1 = arith.constant 0 : i32
    return %c0_i32, %c0_i32_0 : i32, i32
  }
  func.func @transform_2(%arg0: i32) -> (i32, i32) {
    %c0_i32 = arith.constant 0 : i32
    %c0_i32_0 = arith.constant 0 : i32
    %c0_i32_1 = arith.constant 0 : i32
    return %c0_i32, %c0_i32_0 : i32, i32
  }
  func.func @transform_3(%arg0: i32) -> (i32, i32) {
    %c0_i32 = arith.constant 0 : i32
    %c0_i32_0 = arith.constant 0 : i32
    %c0_i32_1 = arith.constant 0 : i32
    return %c0_i32, %c0_i32_0 : i32, i32
  }
  func.func @transform_4(%arg0: i32) -> (i32, i32) {
    %c0_i32 = arith.constant 0 : i32
    %c0_i32_0 = arith.constant 0 : i32
    %c0_i32_1 = arith.constant 0 : i32
    return %c0_i32, %c0_i32_0 : i32, i32
  }
  func.func @transform_5(%arg0: i32) -> (i32, i32, i32) {
    %c0_i32 = arith.constant 0 : i32
    %c0_i32_0 = arith.constant 0 : i32
    %c0_i32_1 = arith.constant 0 : i32
    return %arg0, %c0_i32, %c0_i32_0 : i32, i32, i32
  }
}

</mosaic_0001>

<bundles_post_ra>
// kernel: tpu_custom_call.1
= control target key start
LH: loop header
LB: loop body
LE: loop exit
PB: predicated region body
PF: predicated region fallthrough
CT: control target
= control target key end

     0   :  { %10 = vsyncpa [#allocation3], 0  ;;  %s973_s0 = inlined_call_operand.hbm [shape: f32[2,8,32], index: 0, kind: input, shape index: {}]   ;;  %s974_s1 = inlined_call_operand.hbm [shape: f32[32,96], index: 1, kind: input, shape index: {}]   ;;  %s975_s2 = inlined_call_operand.vmem [shape: f32[1,96], index: 2, kind: input, shape index: {}]   ;;  %s976_s3 = inlined_call_operand.hbm [shape: f32[32,32], index: 3, kind: input, shape index: {}]   ;;  %s977_s4 = inlined_call_operand.vmem [shape: f32[1,32], index: 4, kind: input, shape index: {}]   ;;  %s978_s5 = inlined_call_operand.hbm [shape: f32[2,8,32], index: 5, kind: output, shape index: {}]  }
   0x1   :  { %11 = vsyncpa [#allocation6], 0 }
   0x2   :  { %12 = vsyncpa [#allocation4], 0  ;;  %s832_s18 = smov [#allocation5]   ;;  %s833_s20 = smov [#allocation2]  }
   0x3   :  { %s30_s19 = sshll.u32 %s832_s18, 4  ;;  %s18_s21 = sshll.u32 %s833_s20, 4  ;;  %s31_s19 = int_to_ptr.vmem [resolvable:$true] %s30_s19  ;;  %s872_s21 = int_to_ptr.vmem [resolvable:$true] %s18_s21 }
   0x4   :  { %s738_s24 = scalar_lea.hbm %s974_s1, 512 }
   0x5   :  { %p739_p0 = scmp.ne.s32.totalorder %s974_s1, %s738_s24  ;;  %p742_p1 = scmp.lt.u32.totalorder %s738_s24, %s974_s1 }
   0x7   :  { %p744_p2 = pnand %p742_p1, %p739_p0 }
   0x9   :  { %747 = shalt.err (!%p744_p2)
}
   0xa   :  { %s748_s29 = scalar_lea.vmem %s31_s19, 512  ;;  %p753_p4 = scmp.lt.s32.totalorder %s31_s19, %s31_s19 }
   0xb   :  { %p749_p3 = scmp.ne.s32.totalorder %s31_s19, %s748_s29  ;;  %p754_p5 = scmp.lt.s32.totalorder %s748_s29, %s748_s29 }
   0xd   :  { %p755_p6 = por %p754_p5, %p753_p4 }
   0xf   :  { %p756_p7 = pnand %p755_p6, %p749_p3 }
  0x11   :  { %759 = shalt.err (!%p756_p7)
}
  0x12   :  { %s834_s30 = smov 128   ;;  %s835_s6 = smov 8  }
  0x13   :  { %36 = dma.hbm_to_vmem [thread:$0]  %s974_s1, 512, %s31_s19, [#allocation6], %s834_s30, %s834_s30, %s835_s6  }
  0x14   :  { %s760_s11 = scalar_lea.hbm %s973_s0, 256 }
  0x15   :  { %p761_p8 = scmp.ne.s32.totalorder %s973_s0, %s760_s11  ;;  %p764_p9 = scmp.lt.u32.totalorder %s760_s11, %s973_s0 }
  0x17   :  { %p766_p10 = pnand %p764_p9, %p761_p8 }
  0x19   :  { %769 = shalt.err (!%p766_p10)
}
  0x1a   :  { %s770_s16 = scalar_lea.vmem %s872_s21, 256  ;;  %p775_p12 = scmp.lt.s32.totalorder %s872_s21, %s872_s21 }
  0x1b   :  { %p771_p11 = scmp.ne.s32.totalorder %s872_s21, %s770_s16  ;;  %p776_p13 = scmp.lt.s32.totalorder %s770_s16, %s770_s16 }
  0x1d   :  { %p777_p0 = por %p776_p13, %p775_p12 }
  0x1f   :  { %p778_p1 = pnand %p777_p0, %p771_p11 }
  0x21   :  { %781 = shalt.err (!%p778_p1)
}
  0x22   :  { %24 = dma.hbm_to_vmem [thread:$0]  %s973_s0, 256, %s872_s21, [#allocation3], %s834_s30, %s834_s30, %s835_s6  }
  0x23   :  { %s836_s18 = smov [#allocation7]   ;;  %s782_s23 = scalar_lea.hbm %s976_s3, 512 }
  0x24   :  { %s44_s19 = sshll.u32 %s836_s18, 4  ;;  %p783_p2 = scmp.ne.s32.totalorder %s976_s3, %s782_s23  ;;  %s45_s19 = int_to_ptr.vmem [resolvable:$true] %s44_s19 }
  0x25   :  { %p786_p3 = scmp.lt.u32.totalorder %s782_s23, %s976_s3 }
  0x27   :  { %p788_p4 = pnand %p786_p3, %p783_p2 }
  0x29   :  { %791 = shalt.err (!%p788_p4)
}
  0x2a   :  { %s792_s28 = scalar_lea.vmem %s45_s19, 512  ;;  %p797_p6 = scmp.lt.s32.totalorder %s45_s19, %s45_s19 }
  0x2b   :  { %p793_p5 = scmp.ne.s32.totalorder %s45_s19, %s792_s28  ;;  %p798_p7 = scmp.lt.s32.totalorder %s792_s28, %s792_s28 }
  0x2d   :  { %p799_p8 = por %p798_p7, %p797_p6 }
  0x2f   :  { %p800_p9 = pnand %p799_p8, %p793_p5 }
  0x31   :  { %803 = shalt.err (!%p800_p9)
}
  0x32   :  { %50 = dma.hbm_to_vmem [thread:$0]  %s976_s3, 512, %s45_s19, [#allocation6], %s834_s30, %s834_s30, %s835_s6  }
  0x33   :  { %826 = dma.done.wait [#allocation3], 256  }
  0x34   :  { %827 = vsyncadd [#allocation3], 4294967040 }
  0x35   :  { %828 = dma.done.wait [#allocation6], 1024  }
  0x36   :  { %829 = vsyncadd [#allocation6], 4294966272  ;;  %vm75_vm0 = vcmask 261120   ;;  %v64_v0 = vld [vmem:[#allocation5] sm:$0xff]  ;;  %v65_v1 = vld [vmem:[#allocation5 + $0x8] sm:$0xff]  ;;  %v837_v8 = vmov 0.0  }
  0x37   :  { %v66_v2 = vld [vmem:[#allocation5 + $0x10] sm:$0xff]  ;;  %v696_v3 = vpack.c.bf16 %v65_v1, %v64_v0  ;;  %v67_v4 = vld [vmem:[#allocation5 + $0x18] sm:$0xff]  ;;  %665 = vmatprep.subr.mxu1 %v837_v8  ;;  %vm838_vm1 = vmmov 0   ;;  %vm325_vm2 = vcmask 64512   ;;  %s840_s7 = smov 64   ;;  %v500_v45 = vld [vmem:[#allocation7] sm:$0xff] }
  0x38   :  { %v62_v5 = vld [vmem:[#allocation2] sm:$0xff]  ;;  %v700_v6 = vpack.c.bf16 %v67_v4, %v66_v2  ;;  %v63_v7 = vld [vmem:[#allocation2 + $0x8] sm:$0xff]  ;;  %667 = vmatprep.mubr.msk.f32.mxu1 %vm838_vm1, %v837_v8  ;;  %v501_v46 = vld [vmem:[#allocation7 + $0x8] sm:$0xff]  ;;  %s841_s10 = smov [#allocation8]  }
  0x39   :  { %662 = vmatprep.mubr.msk.f32.mxu0 %vm75_vm0, %v62_v5  ;;  %697 = vmatprep.subr.bf16.mxu0 %v696_v3  ;;  %v622_v9 = vld [vmem:[%s975_s2] ss:$0 sm:$0xff]  ;;  %s839_s2 = smov 96   ;;  %v704_v47 = vpack.c.bf16 %v501_v46, %v500_v45  ;;  %v503_v56 = vld [vmem:[#allocation7 + $0x18] sm:$0xff]  ;;  %s609_s11 = sshll.u32 %s841_s10, 4  ;;  %s610_s11 = int_to_ptr.vmem [resolvable:$true] %s609_s11 }
  0x3a   :  { %699 = vmatpush3.bf16.msra.mxu0 %v696_v3  ;;  %v502_v55 = vld [vmem:[#allocation7 + $0x10] sm:$0xff]  ;;  %p809_p11 = scmp.lt.s32.totalorder %s610_s11, %s610_s11 }
  0x3b   :  { %701 = vmatprep.subr.bf16.mxu0 %v700_v6  ;;  %v708_v57 = vpack.c.bf16 %v503_v56, %v502_v55  ;;  %v631_v62 = vld [vmem:[%s977_s4] ss:$0 sm:$0xff]  ;;  %s804_s4 = scalar_lea.vmem %s610_s11, 256 }
  0x3c   :  { %p805_p10 = scmp.ne.s32.totalorder %s610_s11, %s804_s4  ;;  %p810_p12 = scmp.lt.s32.totalorder %s804_s4, %s804_s4 }
  0x3e   :  { %703 = vmatpush3.bf16.msra.mxu0 %v700_v6  ;;  %p811_p13 = por %p810_p12, %p809_p11 }
  0x3f   :  { %705 = vmatprep.subr.bf16.mxu0 %v704_v47 }
  0x40   :  { %p812_p0 = pnand %p811_p13, %p805_p10 }
  0x41   :  { %663 = vmatmul.mubr.msk.f32.vlgmr.msra.gmra.mrb[0].mxu0 %vm75_vm0, %v63_v7 }
  0x42   :  { %707 = vmatpush3.bf16.msra.mxu0 %v704_v47 }
  0x43   :  { %709 = vmatprep.subr.bf16.mxu0 %v708_v57 }
  0x46   :  { %711 = vmatpush3.bf16.msra.mxu0 %v708_v57 }
 0x114   :  { %v664_v10 = vpop.f32.mrb[0].mxu0 }
 0x115   :  { %v154_v11 = vadd.f32 %v664_v10, %v622_v9  ;;  %v148_v12 = vpop.f32.mrb[1].mxu0 }
 0x116   :  { %v149_v13 = vadd.f32 %v622_v9, %v148_v12 }
 0x117   :  { %v160_v14 = vmul.f32 0.70710677, %v154_v11  ;;  %v158_v22 = vmul.f32 0.5, %v154_v11 }
 0x118   :  { %v159_v15 = vmul.f32 0.70710677, %v149_v13  ;;  %v157_v18 = vmul.f32 0.5, %v149_v13 }
 0x119   :  { %722 = verf.f32 %v160_v14 }
 0x11a   :  { %724 = verf.f32 %v159_v15 }
 0x123   :  { %v723_v16 = vpop.eup %722 }
 0x124   :  { %v725_v17 = vpop.eup %724  ;;  %v164_v20 = vadd.f32 1.0, %v723_v16 }
 0x125   :  { %v163_v19 = vadd.f32 1.0, %v725_v17 }
 0x126   :  { %v166_v23 = vmul.f32 %v164_v20, %v158_v22 }
 0x127   :  { %v165_v21 = vmul.f32 %v163_v19, %v157_v18 }
 0x128   :  { %v168_v27 = vmul.f32 0.17677669, %v166_v23 }
 0x129   :  { %170 = vrot.lane.b32.xlu0 %v165_v21, %s839_s2  ;;  %v167_v25 = vmul.f32 0.17677669, %v165_v21 }
 0x12d   :  { %248 = vrot.lane.b32.xlu0 %v166_v23, %s839_s2 }
 0x19b   :  { %v171_v24 = vpop.permute.xlu0 %170 }
 0x19c   :  { %666 = vmatpush3.xpose.msk.msra.mxu1 %vm75_vm0, %v171_v24 }
 0x19d   :  { %670 = vmatprep.subr.mxu1 %v837_v8 }
 0x19f   :  { %v249_v26 = vpop.permute.xlu0 %248  ;;  %668 = vmatmul.mubr.msk.f32.vlgmr.msra.gmra.mrb[0].mxu1 %vm75_vm0, %v167_v25 }
 0x1a0   :  { %671 = vmatpush3.xpose.msk.msra.mxu1 %vm75_vm0, %v249_v26  ;;  %672 = vmatprep.mubr.msk.f32.mxu1 %vm838_vm1, %v837_v8 }
 0x1a1   :  { %675 = vmatprep.subr.mxu1 %v837_v8 }
 0x1a3   :  { %673 = vmatmul.mubr.msk.f32.vlgmr.msra.gmra.mrb[2].mxu1 %vm75_vm0, %v168_v27 }
 0x1a4   :  { %677 = vmatprep.mubr.msk.f32.mxu1 %vm838_vm1, %v837_v8 }
 0x272   :  { %v243_v28 = vpop.f32.mrb[0].mxu1 }
 0x273   :  { %v669_v29 = vpop.f32.mrb[1].mxu1  ;;  %v326_v30 = vsel %vm325_vm2, %v243_v28, -inf }
 0x274   :  { %327 = vmax.xlane.f32.xlu1 %v326_v30 }
 0x276   :  { %v321_v31 = vpop.f32.mrb[2].mxu1 }
 0x277   :  { %v674_v32 = vpop.f32.mrb[3].mxu1  ;;  %v329_v33 = vsel %vm325_vm2, %v321_v31, -inf }
 0x278   :  { %330 = vmax.xlane.f32.xlu1 %v329_v33 }
 0x289   :  { %348 = vrot.lane.b32.xlu1 %v165_v21, %s840_s7 }
 0x301   :  { %v328_v34 = vpop.xlane.xlu1 %327 }
 0x302   :  { %v332_v35 = vsub.f32 %v243_v28, %v328_v34 }
 0x304   :  { %v334_v36 = vmul.f32 1.442695, %v332_v35 }
 0x305   :  { %v331_v37 = vpop.xlane.xlu1 %330 }
 0x306   :  { %726 = vpow2.f32 %v334_v36  ;;  %v333_v38 = vsub.f32 %v321_v31, %v331_v37 }
 0x308   :  { %v336_v39 = vmul.f32 1.442695, %v333_v38 }
 0x309   :  { %v349_v40 = vpop.permute.xlu1 %348 }
 0x30a   :  { %728 = vpow2.f32 %v336_v39  ;;  %676 = vmatpush3.msra.mxu1 %v349_v40 }
 0x30b   :  { %680 = vmatprep.subr.mxu1 %v837_v8 }
 0x310   :  { %v727_v41 = vpop.eup %726 }
 0x311   :  { %v338_v42 = vsel %vm325_vm2, %v727_v41, 0.0 }
 0x312   :  { %339 = vadd.xlane.f32.xlu0 %v338_v42 }
 0x314   :  { %v729_v43 = vpop.eup %728 }
 0x315   :  { %v341_v44 = vsel %vm325_vm2, %v729_v43, 0.0 }
 0x316   :  { %342 = vadd.xlane.f32.xlu1 %v341_v44 }
 0x327   :  { %424 = vrot.lane.b32.xlu1 %v166_v23, %s840_s7 }
 0x39f   :  { %v340_v48 = vpop.xlane.xlu0 %339 }
 0x3a0   :  { %730 = vrcp.f32 %v340_v48 }
 0x3a3   :  { %v343_v49 = vpop.xlane.xlu1 %342 }
 0x3a4   :  { %732 = vrcp.f32 %v343_v49 }
 0x3a7   :  { %v425_v52 = vpop.permute.xlu1 %424 }
 0x3aa   :  { %v731_v50 = vpop.eup %730 }
 0x3ab   :  { %v346_v51 = vmul.f32 %v731_v50, %v727_v41 }
 0x3ad   :  { %678 = vmatmul.mubr.msk.f32.vlgmr.msra.gmra.mrb[4].mxu1 %vm325_vm2, %v346_v51 }
 0x3ae   :  { %v733_v53 = vpop.eup %732  ;;  %681 = vmatpush3.msra.mxu1 %v425_v52  ;;  %682 = vmatprep.mubr.msk.f32.mxu1 %vm838_vm1, %v837_v8 }
 0x3af   :  { %v347_v54 = vmul.f32 %v733_v53, %v729_v43 }
 0x3b1   :  { %683 = vmatmul.mubr.msk.f32.vlgmr.msra.gmra.mrb[6].mxu1 %vm325_vm2, %v347_v54 }
 0x480   :  { %v420_v58 = vpop.f32.mrb[4].mxu1 }
 0x481   :  { %v679_v59 = vpop.f32.mrb[5].mxu1  ;;  %693 = vmatprep.mubr.msk.f32.mxu0 %vm75_vm0, %v420_v58 }
 0x484   :  { %v496_v60 = vpop.f32.mrb[6].mxu1 }
 0x485   :  { %v684_v61 = vpop.f32.mrb[7].mxu1  ;;  %694 = vmatmul.mubr.msk.f32.vlgmr.msra.gmra.mrb[2].mxu0 %vm75_vm0, %v496_v60 }
 0x558   :  { %v695_v63 = vpop.f32.mrb[2].mxu0 }
 0x559   :  { %v589_v0 = vadd.f32 %v695_v63, %v631_v62  ;;  %v583_v1 = vpop.f32.mrb[3].mxu0 }
 0x55a   :  { %v584_v2 = vadd.f32 %v631_v62, %v583_v1 }
 0x55b   :  { %v595_v3 = vmul.f32 0.70710677, %v589_v0  ;;  %v593_v7 = vmul.f32 0.5, %v589_v0 }
 0x55c   :  { %v594_v4 = vmul.f32 0.70710677, %v584_v2  ;;  %v592_v9 = vmul.f32 0.5, %v584_v2 }
 0x55d   :  { %734 = verf.f32 %v595_v3 }
 0x55e   :  { %736 = verf.f32 %v594_v4 }
 0x567   :  { %v735_v5 = vpop.eup %734 }
 0x568   :  { %v737_v6 = vpop.eup %736  ;;  %v599_v8 = vadd.f32 1.0, %v735_v5 }
 0x569   :  { %v598_v10 = vadd.f32 1.0, %v737_v6 }
 0x56a   :  { %v601_v11 = vmul.f32 %v599_v8, %v593_v7 }
 0x56b   :  { %v600_v12 = vmul.f32 %v598_v10, %v592_v9 }
 0x56c   :  { %603 = vst.msk [vmem:[#allocation8 + $0x8] sm:$0xff] %vm75_vm0, %v601_v11 }
 0x56d   :  { %602 = vst.msk [vmem:[#allocation8] sm:$0xff] %vm75_vm0, %v600_v12 }
 0x56e   :  { %815 = shalt.err (!%p812_p0)
}
 0x56f   :  { %s816_s14 = scalar_lea.hbm %s978_s5, 256 }
 0x570   :  { %p817_p1 = scmp.ne.s32.totalorder %s978_s5, %s816_s14  ;;  %p820_p2 = scmp.lt.u32.totalorder %s816_s14, %s978_s5 }
 0x572   :  { %p822_p3 = pnand %p820_p2, %p817_p1 }
 0x574   :  { %825 = shalt.err (!%p822_p3)
}
 0x575   :  { %615 = dma.vmem_to_hbm [thread:$0]  %s610_s11, 256, %s978_s5, [#allocation4], %s834_s30, %s834_s30, %s835_s6  }
 0x576   :  { %830 = dma.done.wait [#allocation4], 256  }
 0x577   :  { %831 = vsyncadd [#allocation4], 4294967040 }
 0x578   :  { %619 = vsyncpa [#allocation3], 1 }
 0x579   :  { %620 = vsyncpa [#allocation6], 1 }
 0x57a   :  { %621 = vsyncpa [#allocation4], 1 }

</bundles_post_ra>
